<compile_context>
chip_gen: v6e
topology: v6e:2x2x1
jax: 0.10.0
libtpu: 0.0.40
codegen_flags: <defaults>
</compile_context>

<pallas_src>
import functools

import jax
import jax.numpy as jnp
from jax.experimental import pallas as pl
from jax.experimental.pallas import tpu as pltpu


# ---------------------------------------------------------------------------
# Generation-aware sizing helpers.
# ---------------------------------------------------------------------------
_TARGET_STEP_BYTES = 8 << 20   # per-grid-step HBM traffic target
_MAX_BATCH_BLOCK = 8           # cap on batches fused per step (static unroll)


def _round_up(x, m):
    return (x + m - 1) // m * m


def _vmem_capacity_bytes():
    """Physical VMEM of the local TPU; conservative fallback = v7x (64 MiB)."""
    cap = 64 << 20
    try:
        info = pltpu.get_tpu_info()
        cap = int(getattr(info, "vmem_capacity_bytes", cap)) or cap
    except Exception:
        pass
    return cap


def _choose_tiles(b, s_pad, *, per_col_hbm, per_col_vmem, fixed_vmem, budget,
                  target=_TARGET_STEP_BYTES):
    """Pick (batch_block, lane_tile): each grid step should move ~target HBM
    bytes while the double-buffered working set fits the VMEM budget.
    lane_tile is a multiple of 128 dividing s_pad; batch_block divides b."""
    usable = max(1 << 20, budget - fixed_vmem)
    cols_budget = max(128, usable // max(per_col_vmem, 1))
    cols_target = max(128, target // max(per_col_hbm, 1))
    cols = int(min(cols_budget, cols_target))
    # largest multiple of 128 that divides s_pad and is <= cols
    m_units = s_pad // 128
    k = min(m_units, max(1, cols // 128))
    while m_units % k:
        k -= 1
    tn = 128 * k
    bblk = int(min(b, _MAX_BATCH_BLOCK, max(1, cols // tn)))
    while b % bblk:
        bblk -= 1
    return bblk, tn


# ---------------------------------------------------------------------------
# Kernels.
# ---------------------------------------------------------------------------
def _stats_kernel(x_ref, psum_ref, pmom_ref, *, bblk):
    """Per-block partial X moments: column sums (C,1) and X @ X^T (C,C).
    Fully parallel across the grid; partials are reduced in XLA."""
    ssum = None
    mom = None
    for bi in range(bblk):                           # static unroll, bblk <= 8
        xb = x_ref[bi].astype(jnp.float32)           # (C, tn)
        s_i = jnp.sum(xb, axis=1, keepdims=True)     # (C, 1)
        m_i = jax.lax.dot_general(                   # (C, C) == xb @ xb^T
            xb, xb, (((1,), (1,)), ((), ())),
            preferred_element_type=jnp.float32)
        ssum = s_i if ssum is None else ssum + s_i
        mom = m_i if mom is None else mom + m_i
    psum_ref[0, 0, :, :] = ssum
    pmom_ref[0, 0, :, :] = mom


def _apply_kernel(x_ref, w_ref, scale_ref, shift_ref, o_ref, *, bblk):
    """Y = W @ X, folded BN affine + ReLU, lane-dense store."""
    w = w_ref[...]
    scale = scale_ref[...]                           # (D, 1)
    shift = shift_ref[...]                           # (D, 1)
    for bi in range(bblk):
        y = jnp.dot(w, x_ref[bi], preferred_element_type=jnp.float32)
        o_ref[bi] = jnp.maximum(y * scale + shift, 0.0).astype(o_ref.dtype)


def _linear_kernel(x_ref, w_ref, o_ref, *, bblk):
    w = w_ref[...]
    for bi in range(bblk):
        y = jnp.dot(w, x_ref[bi], preferred_element_type=jnp.float32)
        o_ref[bi] = y.astype(o_ref.dtype)


# ---------------------------------------------------------------------------
# pallas_call wrappers.
# ---------------------------------------------------------------------------
def _stats_call(x3, *, bblk, tn, vmem_limit):
    b, c, s_pad = x3.shape
    nb, nj = b // bblk, s_pad // tn
    kern = functools.partial(_stats_kernel, bblk=bblk)
    return pl.pallas_call(
        kern,
        out_shape=(jax.ShapeDtypeStruct((nb, nj, c, 1), jnp.float32),
                   jax.ShapeDtypeStruct((nb, nj, c, c), jnp.float32)),
        grid_spec=pltpu.PrefetchScalarGridSpec(
            num_scalar_prefetch=0,
            grid=(nb, nj),
            in_specs=[pl.BlockSpec((bblk, c, tn), lambda i, j: (i, 0, j))],
            out_specs=[pl.BlockSpec((1, 1, c, 1), lambda i, j: (i, j, 0, 0)),
                       pl.BlockSpec((1, 1, c, c), lambda i, j: (i, j, 0, 0))],
        ),
        compiler_params=pltpu.CompilerParams(
            dimension_semantics=("parallel", "parallel"),
            vmem_limit_bytes=vmem_limit),
    )(x3)


def _apply_call(x3, weight, scale, shift, *, bblk, tn, vmem_limit):
    b, c, s_pad = x3.shape
    d = weight.shape[0]
    nb, nj = b // bblk, s_pad // tn
    kern = functools.partial(_apply_kernel, bblk=bblk)
    # TODO(synk): once tn is large, pipeline_mode=pl.Buffered(3) on the x spec
    # is a small extra win; omitted to keep the call maximally portable.
    return pl.pallas_call(
        kern,
        out_shape=jax.ShapeDtypeStruct((b, d, s_pad), x3.dtype),
        grid_spec=pltpu.PrefetchScalarGridSpec(
            num_scalar_prefetch=0,
            grid=(nb, nj),
            in_specs=[
                pl.BlockSpec((bblk, c, tn), lambda i, j: (i, 0, j)),
                pl.BlockSpec((d, c), lambda i, j: (0, 0)),    # W      (resident)
                pl.BlockSpec((d, 1), lambda i, j: (0, 0)),    # scale  (resident)
                pl.BlockSpec((d, 1), lambda i, j: (0, 0)),    # shift  (resident)
            ],
            out_specs=pl.BlockSpec((bblk, d, tn), lambda i, j: (i, 0, j)),
        ),
        compiler_params=pltpu.CompilerParams(
            dimension_semantics=("parallel", "parallel"),
            vmem_limit_bytes=vmem_limit),
    )(x3, weight, scale, shift)


def _linear_call(x3, weight, *, bblk, tn, vmem_limit):
    b, c, s_pad = x3.shape
    d = weight.shape[0]
    nb, nj = b // bblk, s_pad // tn
    kern = functools.partial(_linear_kernel, bblk=bblk)
    return pl.pallas_call(
        kern,
        out_shape=jax.ShapeDtypeStruct((b, d, s_pad), x3.dtype),
        grid_spec=pltpu.PrefetchScalarGridSpec(
            num_scalar_prefetch=0,
            grid=(nb, nj),
            in_specs=[
                pl.BlockSpec((bblk, c, tn), lambda i, j: (i, 0, j)),
                pl.BlockSpec((d, c), lambda i, j: (0, 0)),
            ],
            out_specs=pl.BlockSpec((bblk, d, tn), lambda i, j: (i, 0, j)),
        ),
        compiler_params=pltpu.CompilerParams(
            dimension_semantics=("parallel", "parallel"),
            vmem_limit_bytes=vmem_limit),
    )(x3, weight)


# ---------------------------------------------------------------------------
# Public forward.
# ---------------------------------------------------------------------------
def mlp3d_forward(x, weight, gamma=None, beta=None, *, final=False, eps=1e-5):
    """x: (B, C, T, H, W).  weight: (D, C) Linear weight (out, in).
    Returns (B, D, T, H, W), matching torch MLP3D.forward with the module in
    training mode (BatchNorm1d uses biased batch statistics)."""
    b, c, t, h, w = x.shape
    d = weight.shape[0]
    s = t * h * w

    # Free, contiguous, channel-major reshape -- native dtype, no astype here.
    x3 = x.reshape(b, c, s)
    s_pad = _round_up(s, 128)
    if s_pad != s:
        # Zero columns contribute nothing to the moments and padded output
        # columns are sliced off below; keeps stores lane-dense / unmasked.
        x3 = jnp.pad(x3, ((0, 0), (0, 0), (0, s_pad - s)))

    xbytes = jnp.dtype(x3.dtype).itemsize
    obytes = xbytes
    wbytes = jnp.dtype(weight.dtype).itemsize

    cap = _vmem_capacity_bytes()
    budget = int(min(0.4 * cap, 40 << 20))            # tiling working-set budget
    vmem_limit = int(min(0.75 * cap, 2 * budget))     # scoped-VMEM ceiling

    apply_fixed = 2 * (d * c * wbytes + 2 * d * 4)    # resident W/scale/shift
    apply_cols_hbm = c * xbytes + d * obytes
    apply_cols_vmem = 2 * c * xbytes + 2 * d * obytes

    if final:
        bblk, tn = _choose_tiles(b, s_pad, per_col_hbm=apply_cols_hbm,
                                 per_col_vmem=apply_cols_vmem,
                                 fixed_vmem=apply_fixed, budget=budget)
        y3 = _linear_call(x3, weight, bblk=bblk, tn=tn, vmem_limit=vmem_limit)
    else:
        n = b * s                                      # real sample count
        # ---- pass 1: partial X moments (fully parallel grid) --------------
        bblk_s, tn_s = _choose_tiles(b, s_pad, per_col_hbm=c * xbytes,
                                     per_col_vmem=2 * c * xbytes,
                                     fixed_vmem=4 * c * (c + 1) * 4,
                                     budget=budget)
        psum, pmom = _stats_call(x3, bblk=bblk_s, tn=tn_s, vmem_limit=vmem_limit)

        # ---- tiny XLA fold of the partials into per-feature scale/shift ---
        sum_x = jnp.sum(psum, axis=(0, 1))[:, 0]       # (C,)
        mom = jnp.sum(pmom, axis=(0, 1))               # (C, C)
        wf = weight.astype(jnp.float32)
        inv_n = 1.0 / float(n)
        mu_x = sum_x * inv_n
        mean_y = wf @ mu_x                             # (D,)
        # TODO(synk): E[y^2]-E[y]^2 in f32 cancels catastrophically when
        # |mean| >> std; acceptable for BN-style activations.
        ey2 = jnp.sum((wf @ mom) * wf, axis=1) * inv_n
        var = jnp.maximum(ey2 - mean_y * mean_y, 0.0)  # biased (training mode)
        scale = gamma.astype(jnp.float32) / jnp.sqrt(var + eps)
        shift = beta.astype(jnp.float32) - mean_y * scale

        # ---- pass 2: matmul + folded BN + ReLU (fully parallel grid) ------
        bblk, tn = _choose_tiles(b, s_pad, per_col_hbm=apply_cols_hbm,
                                 per_col_vmem=apply_cols_vmem,
                                 fixed_vmem=apply_fixed, budget=budget)
        y3 = _apply_call(x3, weight, scale.reshape(d, 1), shift.reshape(d, 1),
                         bblk=bblk, tn=tn, vmem_limit=vmem_limit)
        # TODO(synk): nn.Dropout(0.1) (Drop_out=True, training mode) is
        # stochastic and not reproduced (identity in eval mode); BatchNorm
        # running_mean/var state updates are not produced (forward math only).

    if s_pad != s:
        y3 = y3[:, :, :s]
    return y3.reshape(b, d, t, h, w)


# ---------------------------------------------------------------------------
# Self-test.
# ---------------------------------------------------------------------------
def _reference(x, weight, gamma, beta, eps=1e-5, with_bn=True):
    B, C = x.shape[0], x.shape[1]
    D = weight.shape[0]
    spatial = x.shape[2:]
    n = B * int(jnp.prod(jnp.array(spatial)))
    x2d = jnp.transpose(x.reshape(B, C, -1), (0, 2, 1)).reshape(n, C)
    y = x2d @ weight.T
    if with_bn:
        mu = y.mean(0)
        var = y.var(0)                                  # biased
        y = jnp.maximum((y - mu) / jnp.sqrt(var + eps) * gamma + beta, 0.0)
    y = y.reshape((B,) + spatial + (D,))
    return jnp.moveaxis(y, -1, 1)


if __name__ == "__main__":
    key = jax.random.PRNGKey(0)
    k_x, k_w, k_x2, k_w2 = jax.random.split(key, 4)

    # ---- case 1: S a multiple of 128 -----------------------------------
    B, C, T, H, W = 2, 4, 4, 8, 8           # S = 256, N = 512
    D = 32
    x = jax.random.normal(k_x, (B, C, T, H, W), dtype=jnp.float32)
    weight = jax.random.normal(k_w, (D, C), dtype=jnp.float32) * 0.5
    gamma = 1.0 + 0.1 * jnp.arange(D, dtype=jnp.float32)
    beta = 0.01 * jnp.arange(D, dtype=jnp.float32)

    out = jax.block_until_ready(mlp3d_forward(x, weight, gamma, beta))
    ref = _reference(x, weight, gamma, beta)
    assert out.shape == (B, D, T, H, W)
    assert jnp.allclose(out, ref, atol=5e-4, rtol=5e-4)

    # final=True branch (plain Linear)
    out_f = jax.block_until_ready(mlp3d_forward(x, weight, final=True))
    ref_f = _reference(x, weight, None, None, with_bn=False)
    assert jnp.allclose(out_f, ref_f, atol=5e-4, rtol=5e-4)

    # ---- case 2: S NOT a multiple of 128 (exercises zero-padding) ------
    B2, C2, T2, H2, W2, D2 = 2, 4, 3, 5, 7, 16          # S = 105
    x2 = jax.random.normal(k_x2, (B2, C2, T2, H2, W2), dtype=jnp.float32)
    w2 = jax.random.normal(k_w2, (D2, C2), dtype=jnp.float32) * 0.5
    g2 = jnp.ones((D2,), jnp.float32)
    b2 = jnp.zeros((D2,), jnp.float32)
    out2 = jax.block_until_ready(mlp3d_forward(x2, w2, g2, b2))
    ref2 = _reference(x2, w2, g2, b2)
    assert out2.shape == (B2, D2, T2, H2, W2)
    assert jnp.allclose(out2, ref2, atol=5e-4, rtol=5e-4)

    print("KERNEL_OK")
</pallas_src>

<mosaic_0001>
module attributes {stable_mosaic.version = 11 : i64} {
  func.func @_stats_kernel(%arg0: i32, %arg1: i32, %arg2: memref<2x4x256xf32, #tpu.memory_space<vmem>>, %arg3: memref<1x1x4x1xf32, #tpu.memory_space<vmem>>, %arg4: memref<1x1x4x4xf32, #tpu.memory_space<vmem>>) attributes {dimension_semantics = [#tpu.dimension_semantics<parallel>, #tpu.dimension_semantics<parallel>], iteration_bounds = array<i64: 1, 1>, scalar_prefetch = 0 : i64, scratch_operands = 0 : i64, tpu.core_type = #tpu.core_type<tc>, window_params = [{transform_indices = @transform_0, window_bounds = array<i64: 2, 4, 256>}, {transform_indices = @transform_1, window_bounds = array<i64: 1, 1, 4, 1>}, {transform_indices = @transform_2, window_bounds = array<i64: 1, 1, 4, 4>}]} {
    %c0 = arith.constant 0 : index
    %c0_0 = arith.constant 0 : index
    %c0_1 = arith.constant 0 : index
    %0 = vector.load %arg2[%c0, %c0_0, %c0_1] : memref<2x4x256xf32, #tpu.memory_space<vmem>>, vector<1x4x256xf32>
    %1 = vector.shape_cast %0 : vector<1x4x256xf32> to vector<4x256xf32>
    %cst = arith.constant dense<0.000000e+00> : vector<4xf32>
    %2 = vector.multi_reduction <add>, %1, %cst [1] : vector<4x256xf32> to vector<4xf32>
    %3 = vector.shape_cast %2 : vector<4xf32> to vector<4x1xf32>
    %cst_2 = arith.constant dense<0.000000e+00> : vector<4x4xf32>
    %4 = tpu.matmul %1, %1, %cst_2 {dimension_numbers = #tpu.dot_dimension_numbers<[1], [1], [0], [0], [0, 0, 1, 0], [], []>} : vector<4x256xf32>, vector<4x256xf32>, vector<4x4xf32> -> vector<4x4xf32>
    %c1 = arith.constant 1 : index
    %c0_3 = arith.constant 0 : index
    %c0_4 = arith.constant 0 : index
    %5 = vector.load %arg2[%c1, %c0_3, %c0_4] : memref<2x4x256xf32, #tpu.memory_space<vmem>>, vector<1x4x256xf32>
    %6 = vector.shape_cast %5 : vector<1x4x256xf32> to vector<4x256xf32>
    %cst_5 = arith.constant dense<0.000000e+00> : vector<4xf32>
    %7 = vector.multi_reduction <add>, %6, %cst_5 [1] : vector<4x256xf32> to vector<4xf32>
    %8 = vector.shape_cast %7 : vector<4xf32> to vector<4x1xf32>
    %cst_6 = arith.constant dense<0.000000e+00> : vector<4x4xf32>
    %9 = tpu.matmul %6, %6, %cst_6 {dimension_numbers = #tpu.dot_dimension_numbers<[1], [1], [0], [0], [0, 0, 1, 0], [], []>} : vector<4x256xf32>, vector<4x256xf32>, vector<4x4xf32> -> vector<4x4xf32>
    %10 = arith.addf %3, %8 : vector<4x1xf32>
    %11 = arith.addf %4, %9 : vector<4x4xf32>
    %c0_7 = arith.constant 0 : index
    %c0_8 = arith.constant 0 : index
    %c0_9 = arith.constant 0 : index
    %c0_10 = arith.constant 0 : index
    %12 = vector.load %arg3[%c0_7, %c0_8, %c0_9, %c0_10] : memref<1x1x4x1xf32, #tpu.memory_space<vmem>>, vector<1x1x4x1xf32>
    %13 = vector.shape_cast %12 : vector<1x1x4x1xf32> to vector<4x1xf32>
    %14 = vector.shape_cast %10 : vector<4x1xf32> to vector<1x1x4x1xf32>
    tpu.vector_store %arg3[%c0_7, %c0_8, %c0_9, %c0_10], %14 {strides = array<i32>} : memref<1x1x4x1xf32, #tpu.memory_space<vmem>>, vector<1x1x4x1xf32>,
    %c0_11 = arith.constant 0 : index
    %c0_12 = arith.constant 0 : index
    %c0_13 = arith.constant 0 : index
    %c0_14 = arith.constant 0 : index
    %15 = vector.load %arg4[%c0_11, %c0_12, %c0_13, %c0_14] : memref<1x1x4x4xf32, #tpu.memory_space<vmem>>, vector<1x1x4x4xf32>
    %16 = vector.shape_cast %15 : vector<1x1x4x4xf32> to vector<4x4xf32>
    %17 = vector.shape_cast %11 : vector<4x4xf32> to vector<1x1x4x4xf32>
    tpu.vector_store %arg4[%c0_11, %c0_12, %c0_13, %c0_14], %17 {strides = array<i32>} : memref<1x1x4x4xf32, #tpu.memory_space<vmem>>, vector<1x1x4x4xf32>,
    return
  }
  func.func @transform_0(%arg0: i32, %arg1: i32) -> (i32, i32, i32) {
    %c0_i32 = arith.constant 0 : i32
    %c0_i32_0 = arith.constant 0 : i32
    return %arg0, %c0_i32, %arg1 : i32, i32, i32
  }
  func.func @transform_1(%arg0: i32, %arg1: i32) -> (i32, i32, i32, i32) {
    %c0_i32 = arith.constant 0 : i32
    %c0_i32_0 = arith.constant 0 : i32
    %c0_i32_1 = arith.constant 0 : i32
    return %arg0, %arg1, %c0_i32, %c0_i32_0 : i32, i32, i32, i32
  }
  func.func @transform_2(%arg0: i32, %arg1: i32) -> (i32, i32, i32, i32) {
    %c0_i32 = arith.constant 0 : i32
    %c0_i32_0 = arith.constant 0 : i32
    %c0_i32_1 = arith.constant 0 : i32
    return %arg0, %arg1, %c0_i32, %c0_i32_0 : i32, i32, i32, i32
  }
}

</mosaic_0001>

<bundles_post_ra>
// kernel: tpu_custom_call.1
= control target key start
LH: loop header
LB: loop body
LE: loop exit
PB: predicated region body
PF: predicated region fallthrough
CT: control target
= control target key end

     0   :  { %8 = vsyncpa [#allocation3], 0  ;;  %s287_s0 = inlined_call_operand.hbm [shape: f32[2,4,256], index: 0, kind: input, shape index: {}]   ;;  %s288_s1 = inlined_call_operand.vmem [shape: f32[1,1,4,1], index: 1, kind: output, shape index: {0}]   ;;  %s289_s2 = inlined_call_operand.hbm [shape: f32[1,1,4,4], index: 2, kind: output, shape index: {1}]  }
   0x1   :  { %9 = vsyncpa [#allocation4], 0  ;;  %s259_s9 = smov [#allocation2]  }
   0x2   :  { %s15_s10 = sshll.u32 %s259_s9, 4  ;;  %s16_s10 = int_to_ptr.vmem [resolvable:$true] %s15_s10 }
   0x3   :  { %s223_s11 = scalar_lea.vmem %s16_s10, 256  ;;  %p228_p1 = scmp.lt.s32.totalorder %s16_s10, %s16_s10 }
   0x4   :  { %p224_p0 = scmp.ne.s32.totalorder %s16_s10, %s223_s11  ;;  %p229_p2 = scmp.lt.s32.totalorder %s223_s11, %s223_s11 }
   0x6   :  { %p230_p3 = por %p229_p2, %p228_p1 }
   0x8   :  { %p231_p4 = pnand %p230_p3, %p224_p0 }
   0xa   :  { %234 = shalt.err (!%p231_p4)
}
   0xb   :  { %s260_s12 = smov 128   ;;  %s261_s13 = smov 8  }
   0xc   :  { %21 = dma.hbm_to_vmem [thread:$0]  %s287_s0, 256, %s16_s10, [#allocation3], %s260_s12, %s260_s12, %s261_s13  }
   0xd   :  { %255 = dma.done.wait [#allocation3], 256  }
   0xe   :  { %256 = vsyncadd [#allocation3], 4294967040  ;;  %vm29_vm0 = vcmask 1043456   ;;  %v36_v0 = vld [vmem:[#allocation2 + $0x8] sm:$0xff]  ;;  %v25_v1 = vld [vmem:[#allocation2] sm:$0xff]  ;;  %vm186_vm1 = vcmask 3072  }
   0xf   :  { %v38_v2 = vcombine.high %v36_v0, %v36_v0  ;;  %v27_v3 = vcombine.high %v25_v1, %v25_v1  ;;  %v30_v4 = vsel %vm29_vm0, %v25_v1, 0.0  ;;  %v40_v6 = vsel %vm29_vm0, %v36_v0, 0.0  ;;  %s262_s17 = smov [#allocation5]  }
  0x10   :  { %s198_s18 = sshll.u32 %s262_s17, 4  ;;  %vm188_vm2 = vcmask 27648   ;;  %s199_s18 = int_to_ptr.vmem [resolvable:$true] %s198_s18 }
  0x11   :  { %75 = vmatprep.subr.mxu0 %v38_v2  ;;  %146 = vmatprep.subr.mxu1 %v27_v3  ;;  %v31_v5 = vsel %vm29_vm0, %v27_v3, 0.0  ;;  %v41_v7 = vsel %vm29_vm0, %v38_v2, 0.0  ;;  %s235_s19 = scalar_lea.vmem %s199_s18, 64  ;;  %p240_p6 = scmp.lt.s32.totalorder %s199_s18, %s199_s18 }
  0x12   :  { %76 = vmatpush1.xpose.msra.mxu0 %v36_v0  ;;  %147 = vmatpush1.xpose.msra.mxu1 %v25_v1  ;;  %v32_v8 = vadd.f32 %v31_v5, %v30_v4  ;;  %v42_v9 = vadd.f32 %v41_v7, %v40_v6  ;;  %p236_p5 = scmp.ne.s32.totalorder %s199_s18, %s235_s19  ;;  %p241_p7 = scmp.lt.s32.totalorder %s235_s19, %s235_s19 }
  0x13   :  { %109 = vmatprep.mubr.f32.mxu0 %v38_v2  ;;  %180 = vmatprep.mubr.f32.mxu1 %v27_v3 }
  0x14   :  { %33 = vadd.xlane.f32.xlu0 %v32_v8  ;;  %p242_p8 = por %p241_p7, %p240_p6 }
  0x15   :  { %110 = vmatmul.mubr.f32.vlgmr.msra.gmra.mxu0 %v36_v0  ;;  %181 = vmatmul.mubr.f32.vlgmr.msra.gmra.mxu1 %v25_v1 }
  0x16   :  { %p243_p9 = pnand %p242_p8, %p236_p5 }
  0x18   :  { %43 = vadd.xlane.f32.xlu0 %v42_v9 }
  0x9d   :  { %v34_v10 = vpop.xlane.xlu0 %33 }
  0xa1   :  { %v44_v11 = vpop.xlane.xlu0 %43 }
  0xa2   :  { %v115_v12 = vadd.f32 %v44_v11, %v34_v10 }
  0xa4   :  { %187 = vst.msk [vmem:[%s288_s1] sm:$0xf] %vm186_vm1, %v115_v12 }
  0xd5   :  { %v111_v13 = vpop.f32.mrf.mxu0  ;;  %v182_v14 = vpop.f32.mrf.mxu1 }
  0xd6   :  { %v183_v15 = vadd.f32 %v182_v14, %v111_v13 }
  0xd7   :  { %v113_v16 = vpop.f32.mrf.mxu0  ;;  %v184_v17 = vpop.f32.mrf.mxu1 }
  0xd8   :  { %189 = vst.msk [vmem:[#allocation5] sm:$0xf] %vm188_vm2, %v183_v15 }
  0xd9   :  { %246 = shalt.err (!%p243_p9)
}
  0xda   :  { %201 = dma.vmem_to_hbm [thread:$0]  %s199_s18, 64, %s289_s2, [#allocation4]  }
  0xdb   :  { %257 = dma.done.wait [#allocation4], 64  }
  0xdc   :  { %258 = vsyncadd [#allocation4], 4294967232 }
  0xdd   :  { %207 = vsyncpa [#allocation3], 1 }
  0xde   :  { %208 = vsyncpa [#allocation4], 1 }

</bundles_post_ra>
